<compile_context>
chip_gen: v7x
topology: tpu7x:2x2x1
jax: 0.10.0
libtpu: 0.0.40
codegen_flags: <defaults>
</compile_context>

<pallas_src>
import functools

import jax
import jax.numpy as jnp
from jax import lax
from jax.experimental import pallas as pl
from jax.experimental.pallas import tpu as pltpu


def _round_up(x, m):
    return ((x + m - 1) // m) * m


def _early_fusion_kernel(b_ref, x1_ref, x2_ref, w_ref, out_ref, *, c3d_weight):
    # x1_ref / x2_ref: [tm, H] row tiles of the two feature streams (auto-pipelined).
    x1 = x1_ref[...].astype(jnp.float32)
    x2 = x2_ref[...].astype(jnp.float32)

    # Weighted early fusion (VPU).
    fused = c3d_weight * x1 + (1.0 - c3d_weight) * x2            # [tm, H] f32

    # Folded fc1∘fc2 projection: contract H of w ([1, H]) against H of fused
    # ([tm, H]) so the result is [1, tm] with rows on lanes (lane-dense store).
    w = w_ref[...].astype(jnp.float32)                           # [1, H]
    r = lax.dot_general(
        w, fused,
        dimension_numbers=(((1,), (1,)), ((), ())),
        preferred_element_type=jnp.float32,
    )                                                            # [1, tm]

    # Bias is a scalar read from SMEM.
    out_ref[...] = jnp.reshape(r + b_ref[0, 0], out_ref.shape)   # [1, 1, tm]


def early_fusion_forward(x1, x2, params, *, c3d_weight):
    """x1, x2: [B, T, H] features from the two sub-models.
    Returns squeeze([B, T, 1]) to mirror torch's x.squeeze()."""
    B, T, H = x1.shape
    M = B * T
    x1f = x1.reshape(M, H)
    x2f = x2.reshape(M, H)

    # Fold fc2 ∘ fc1 (both affine, nothing in between) into one H->1 projection,
    # precomputed host-side in f32:  y = x @ (w1 @ w2) + (b1 @ w2 + b2)
    w1 = params["w1"].astype(jnp.float32)          # [H, H]  (in, out)
    b1 = params["b1"].astype(jnp.float32)          # [1, H]
    w2 = params["w2"].astype(jnp.float32)          # [H, 1]
    b2 = params["b2"].astype(jnp.float32)          # [1, 1]
    w_comb = jnp.dot(w1, w2).reshape(1, H)         # [1, H]
    b_comb = (jnp.dot(b1, w2) + b2).reshape(1, 1)  # [1, 1]  -> SMEM scalar

    # Row-tile size: keep 2 inputs x 2 pipeline buffers x (tm*H*bytes) inside a
    # small VMEM budget so the same tm works on v5e/v6e and v7x (64 MiB VMEM).
    bytes_per = jnp.dtype(x1f.dtype).itemsize
    budget = 8 * 1024 * 1024
    tm = budget // (4 * H * bytes_per)
    tm = max(8, min(2048, int(tm)))
    tm = (tm // 8) * 8
    tm = min(tm, _round_up(M, 8))
    num_tiles = pl.cdiv(M, tm)
    M_pad = num_tiles * tm

    if M_pad != M:
        pad = M_pad - M
        x1f = jnp.pad(x1f, ((0, pad), (0, 0)))
        x2f = jnp.pad(x2f, ((0, pad), (0, 0)))

    out = pl.pallas_call(
        functools.partial(_early_fusion_kernel, c3d_weight=float(c3d_weight)),
        out_shape=jax.ShapeDtypeStruct((num_tiles, 1, tm), jnp.float32),
        grid_spec=pltpu.PrefetchScalarGridSpec(
            num_scalar_prefetch=0,
            grid=(num_tiles,),
            in_specs=[
                pl.BlockSpec(memory_space=pltpu.MemorySpace.SMEM),  # b_comb (1,1)
                pl.BlockSpec((tm, H), lambda i: (i, 0)),            # x1 row tile
                pl.BlockSpec((tm, H), lambda i: (i, 0)),            # x2 row tile
                pl.BlockSpec((1, H), lambda i: (0, 0)),             # w_comb (pinned)
            ],
            out_specs=pl.BlockSpec((1, 1, tm), lambda i: (i, 0, 0)),
        ),
        compiler_params=pltpu.CompilerParams(
            dimension_semantics=("parallel",),      # shards row tiles across TCs (v7x)
            vmem_limit_bytes=32 * 1024 * 1024,
        ),
    )(b_comb, x1f, x2f, w_comb)

    out = out.reshape(M_pad)[:M].reshape(B, T, 1)
    return jnp.squeeze(out)  # mirrors torch's x.squeeze() (removes ALL size-1 dims)


def init_params(key, rnn_hid_size):
    """nn.Linear-shaped params (non-bidirectional branch: att2 H->1, fc1 H->H,
    fc2 H->1), stored transposed ([in, out]) for x @ W use."""
    H = rnn_hid_size
    k = jax.random.split(key, 6)
    s = 1.0 / jnp.sqrt(H)
    return {
        "w_att2": jax.random.uniform(k[0], (H, 1), jnp.float32, -s, s),
        "b_att2": jax.random.uniform(k[1], (1, 1), jnp.float32, -s, s),
        "w1":     jax.random.uniform(k[2], (H, H), jnp.float32, -s, s),
        "b1":     jax.random.uniform(k[3], (1, H), jnp.float32, -s, s),
        "w2":     jax.random.uniform(k[4], (H, 1), jnp.float32, -s, s),
        "b2":     jax.random.uniform(k[5], (1, 1), jnp.float32, -s, s),
    }


def reference_forward(x1, x2, params, *, c3d_weight):
    """Pure-JAX reference mirroring the PyTorch forward (early branch) exactly."""
    _ = jax.nn.sigmoid(x2 @ params["w_att2"] + params["b_att2"])  # discarded
    x = c3d_weight * x1 + x2 * (1.0 - c3d_weight)
    x = x @ params["w1"] + params["b1"]
    x = x @ params["w2"] + params["b2"]
    return jnp.squeeze(x)


if __name__ == "__main__":
    B, T, H = 2, 8, 32          # batch, seq, rnn_hid_size
    c3d_weight = 0.6

    key = jax.random.PRNGKey(0)
    k1, k2, kp = jax.random.split(key, 3)
    x1 = jax.random.normal(k1, (B, T, H), jnp.float32)   # model1 output features
    x2 = jax.random.normal(k2, (B, T, H), jnp.float32)   # model2 output features
    params = init_params(kp, H)

    out = early_fusion_forward(x1, x2, params, c3d_weight=c3d_weight)
    out = jax.block_until_ready(out)

    ref = reference_forward(x1, x2, params, c3d_weight=c3d_weight)
    assert out.shape == ref.shape, (out.shape, ref.shape)
    assert jnp.allclose(out, ref, atol=1e-4, rtol=1e-4), \
        float(jnp.max(jnp.abs(out - ref)))

    print("KERNEL_OK")
</pallas_src>

<mosaic_0001>
module attributes {stable_mosaic.version = 11 : i64} {
  func.func @_early_fusion_kernel(%arg0: i32, %arg1: memref<1x1xf32, #tpu.memory_space<smem>>, %arg2: memref<16x32xf32, #tpu.memory_space<vmem>>, %arg3: memref<16x32xf32, #tpu.memory_space<vmem>>, %arg4: memref<1x32xf32, #tpu.memory_space<vmem>>, %arg5: memref<1x1x16xf32, #tpu.memory_space<vmem>>) attributes {dimension_semantics = [#tpu.dimension_semantics<parallel>], iteration_bounds = array<i64: 1>, scalar_prefetch = 0 : i64, scratch_operands = 0 : i64, tpu.core_type = #tpu.core_type<tc>, window_params = [{transform_indices = @transform_0, window_bounds = array<i64: 1, 1>}, {transform_indices = @transform_1, window_bounds = array<i64: 16, 32>}, {transform_indices = @transform_2, window_bounds = array<i64: 16, 32>}, {pipeline_mode = #tpu.pipeline_mode<synchronous>, transform_indices = @transform_3, window_bounds = array<i64: 1, 32>}, {transform_indices = @transform_4, window_bounds = array<i64: 1, 1, 16>}]} {
    %c0 = arith.constant 0 : index
    %c0_0 = arith.constant 0 : index
    %0 = vector.load %arg2[%c0, %c0_0] : memref<16x32xf32, #tpu.memory_space<vmem>>, vector<16x32xf32>
    %c0_1 = arith.constant 0 : index
    %c0_2 = arith.constant 0 : index
    %1 = vector.load %arg3[%c0_1, %c0_2] : memref<16x32xf32, #tpu.memory_space<vmem>>, vector<16x32xf32>
    %cst = arith.constant 6.000000e-01 : f32
    %2 = vector.broadcast %cst : f32 to vector<16x32xf32>
    %3 = arith.mulf %2, %0 : vector<16x32xf32>
    %cst_3 = arith.constant 4.000000e-01 : f32
    %4 = vector.broadcast %cst_3 : f32 to vector<16x32xf32>
    %5 = arith.mulf %4, %1 : vector<16x32xf32>
    %6 = arith.addf %3, %5 : vector<16x32xf32>
    %c0_4 = arith.constant 0 : index
    %c0_5 = arith.constant 0 : index
    %7 = vector.load %arg4[%c0_4, %c0_5] : memref<1x32xf32, #tpu.memory_space<vmem>>, vector<1x32xf32>
    %cst_6 = arith.constant dense<0.000000e+00> : vector<1x16xf32>
    %8 = tpu.matmul %7, %6, %cst_6 {dimension_numbers = #tpu.dot_dimension_numbers<[1], [1], [0], [0], [0, 0, 1, 0], [], []>} : vector<1x32xf32>, vector<16x32xf32>, vector<1x16xf32> -> vector<1x16xf32>
    %c0_7 = arith.constant 0 : index
    %c0_8 = arith.constant 0 : index
    %9 = memref.load %arg1[%c0_7, %c0_8] : memref<1x1xf32, #tpu.memory_space<smem>>
    %10 = vector.broadcast %9 : f32 to vector<1x16xf32>
    %11 = arith.addf %8, %10 : vector<1x16xf32>
    %12 = vector.shape_cast %11 : vector<1x16xf32> to vector<1x1x16xf32>
    %c0_9 = arith.constant 0 : index
    %c0_10 = arith.constant 0 : index
    %c0_11 = arith.constant 0 : index
    %13 = vector.load %arg5[%c0_9, %c0_10, %c0_11] : memref<1x1x16xf32, #tpu.memory_space<vmem>>, vector<1x1x16xf32>
    tpu.vector_store %arg5[%c0_9, %c0_10, %c0_11], %12 {strides = array<i32>} : memref<1x1x16xf32, #tpu.memory_space<vmem>>, vector<1x1x16xf32>,
    return
  }
  func.func @transform_0(%arg0: i32) -> (i32, i32) {
    %c0_i32 = arith.constant 0 : i32
    %c0_i32_0 = arith.constant 0 : i32
    %c0_i32_1 = arith.constant 0 : i32
    return %c0_i32, %c0_i32_0 : i32, i32
  }
  func.func @transform_1(%arg0: i32) -> (i32, i32) {
    %c0_i32 = arith.constant 0 : i32
    %c0_i32_0 = arith.constant 0 : i32
    return %arg0, %c0_i32 : i32, i32
  }
  func.func @transform_2(%arg0: i32) -> (i32, i32) {
    %c0_i32 = arith.constant 0 : i32
    %c0_i32_0 = arith.constant 0 : i32
    return %arg0, %c0_i32 : i32, i32
  }
  func.func @transform_3(%arg0: i32) -> (i32, i32) {
    %c0_i32 = arith.constant 0 : i32
    %c0_i32_0 = arith.constant 0 : i32
    %c0_i32_1 = arith.constant 0 : i32
    return %c0_i32, %c0_i32_0 : i32, i32
  }
  func.func @transform_4(%arg0: i32) -> (i32, i32, i32) {
    %c0_i32 = arith.constant 0 : i32
    %c0_i32_0 = arith.constant 0 : i32
    %c0_i32_1 = arith.constant 0 : i32
    return %arg0, %c0_i32, %c0_i32_0 : i32, i32, i32
  }
}

</mosaic_0001>

<bundles_post_ra>
// kernel: tpu_custom_call.1
= control target key start
LH: loop header
LB: loop body
LE: loop exit
PB: predicated region body
PF: predicated region fallthrough
CT: control target
= control target key end

     0   :  { %10 = vsyncpa [#allocation4], 0  ;;  %s330_s0 = inlined_call_operand.<no memory space> [shape: f32[1,1], index: 0, kind: input, shape index: {}]   ;;  %s331_s1 = inlined_call_operand.hbm [shape: f32[16,32], index: 1, kind: input, shape index: {}]   ;;  %s332_s2 = inlined_call_operand.hbm [shape: f32[16,32], index: 2, kind: input, shape index: {}]   ;;  %s333_s3 = inlined_call_operand.vmem [shape: f32[1,32], index: 3, kind: input, shape index: {}]   ;;  %s334_s4 = inlined_call_operand.hbm [shape: f32[1,1,16], index: 4, kind: output, shape index: {}]  }
   0x1   :  { %11 = vsyncpa [#allocation7], 0 }
   0x2   :  { %12 = vsyncpa [#allocation5], 0  ;;  %s255_s15 = smov [#allocation3]   ;;  %s183_s19 = scalar_lea.hbm %s331_s1, 256 }
   0x3   :  { %s20_s16 = sshll.u32 %s255_s15, 4  ;;  %p184_p0 = scmp.ne.s32.totalorder %s331_s1, %s183_s19  ;;  %s21_s16 = int_to_ptr.vmem [resolvable:$true] %s20_s16 }
   0x4   :  { %p187_p1 = scmp.lt.u32.totalorder %s183_s19, %s331_s1 }
   0x6   :  { %p189_p2 = pnand %p187_p1, %p184_p0 }
   0x8   :  { %192 = shalt.err (!%p189_p2)
}
   0x9   :  { %s193_s24 = scalar_lea.vmem %s21_s16, 256  ;;  %p198_p4 = scmp.lt.s32.totalorder %s21_s16, %s21_s16 }
   0xa   :  { %p194_p3 = scmp.ne.s32.totalorder %s21_s16, %s193_s24  ;;  %p199_p5 = scmp.lt.s32.totalorder %s193_s24, %s193_s24 }
   0xc   :  { %p200_p6 = por %p199_p5, %p198_p4 }
   0xe   :  { %p201_p7 = pnand %p200_p6, %p194_p3 }
  0x10   :  { %204 = shalt.err (!%p201_p7)
}
  0x11   :  { %s256_s25 = smov 128   ;;  %s257_s26 = smov 8  }
  0x12   :  { %26 = dma.hbm_to_vmem [thread:$0]  %s331_s1, 256, %s21_s16, [#allocation4], %s256_s25, %s256_s25, %s257_s26  }
  0x13   :  { %s258_s29 = smov [#allocation6]   ;;  %s205_s7 = scalar_lea.hbm %s332_s2, 256 }
  0x14   :  { %s32_s30 = sshll.u32 %s258_s29, 4  ;;  %p206_p8 = scmp.ne.s32.totalorder %s332_s2, %s205_s7  ;;  %s33_s30 = int_to_ptr.vmem [resolvable:$true] %s32_s30 }
  0x15   :  { %p209_p9 = scmp.lt.u32.totalorder %s205_s7, %s332_s2 }
  0x17   :  { %p211_p10 = pnand %p209_p9, %p206_p8 }
  0x19   :  { %214 = shalt.err (!%p211_p10)
}
  0x1a   :  { %s215_s12 = scalar_lea.vmem %s33_s30, 256  ;;  %p220_p12 = scmp.lt.s32.totalorder %s33_s30, %s33_s30 }
  0x1b   :  { %p216_p11 = scmp.ne.s32.totalorder %s33_s30, %s215_s12  ;;  %p221_p13 = scmp.lt.s32.totalorder %s215_s12, %s215_s12 }
  0x1d   :  { %p222_p0 = por %p221_p13, %p220_p12 }
  0x1f   :  { %p223_p1 = pnand %p222_p0, %p216_p11 }
  0x21   :  { %226 = shalt.err (!%p223_p1)
}
  0x22   :  { %38 = dma.hbm_to_vmem [thread:$0]  %s332_s2, 256, %s33_s30, [#allocation7], %s256_s25, %s256_s25, %s257_s26  }
  0x23   :  { %249 = dma.done.wait [#allocation4], 256  }
  0x24   :  { %250 = vsyncadd [#allocation4], 4294967040 }
  0x25   :  { %251 = dma.done.wait [#allocation7], 256  }
  0x26   :  { %252 = vsyncadd [#allocation7], 4294967040  ;;  %v259_v0 = vmov 0.0|0.0   ;;  %vm260_vm0 = vmmov 0   ;;  %v261_v1 = vmov 0.0   ;;  %v47_v2 = vld [vmem:[#allocation3] sm:$0xff]  ;;  %v59_v14 = vstv %s330_s0 }
  0x27   :  { %171 = vmatprep.subr.bf16.mxu0 %v259_v0  ;;  %168 = vmatprep.mubr.msk.f32.mxu0 %vm260_vm0, %v261_v1  ;;  %v48_v3 = vld [vmem:[#allocation3 + $0x8] sm:$0xff]  ;;  %v49_v4 = vld [vmem:[#allocation6] sm:$0xff]  ;;  %v50_v5 = vld [vmem:[#allocation6 + $0x8] sm:$0xff]  ;;  %v51_v6 = vmul.f32 0.6, %v47_v2  ;;  %vm60_vm1 = vcmask 261120  }
  0x28   :  { %v52_v7 = vmul.f32 0.6, %v48_v3  ;;  %v53_v8 = vmul.f32 0.4, %v49_v4  ;;  %v54_v9 = vmul.f32 0.4, %v50_v5  ;;  %vm173_vm2 = vmpackc.low %vm60_vm1, %vm60_vm1 }
  0x29   :  { %v57_v13 = vld [vmem:[%s333_s3] sm:$0x1]  ;;  %s262_s17 = smov [#allocation8]   ;;  %vm140_vm3 = vcmask 122880  }
  0x2a   :  { %v55_v10 = vadd.f32 %v53_v8, %v51_v6  ;;  %v56_v11 = vadd.f32 %v54_v9, %v52_v7  ;;  %s148_s18 = sshll.u32 %s262_s17, 4  ;;  %s149_s18 = int_to_ptr.vmem [resolvable:$true] %s148_s18 }
  0x2b   :  { %s227_s19 = scalar_lea.vmem %s149_s18, 16  ;;  %s231_s20 = scalar_lea.vmem %s149_s18, 32 }
  0x2c   :  { %v172_v12 = vpack.c.bf16 %v56_v11, %v55_v10  ;;  %p228_p2 = scmp.ne.s32.totalorder %s149_s18, %s227_s19  ;;  %p232_p3 = scmp.lt.s32.totalorder %s149_s18, %s149_s18 }
  0x2d   :  { %p233_p4 = scmp.lt.s32.totalorder %s231_s20, %s227_s19 }
  0x2e   :  { %174 = vmatpush3.bf16.xpose.msk.msra.mxu0 %vm173_vm2, %v172_v12 }
  0x2f   :  { %p234_p5 = por %p233_p4, %p232_p3 }
  0x31   :  { %p235_p6 = pnand %p234_p5, %p228_p2 }
  0x35   :  { %169 = vmatmul.mubr.msk.f32.vlgmr.msra.gmra.mrb[0].mxu0 %vm60_vm1, %v57_v13 }
 0x108   :  { %v136_v15 = vpop.f32.mrb[0].mxu0 }
 0x109   :  { %v137_v16 = vadd.f32 %v136_v15, %v59_v14  ;;  %v170_v17 = vpop.f32.mrb[1].mxu0 }
 0x10b   :  { %141 = vst.msk [vmem:[#allocation8] sm:$0x1] %vm140_vm3, %v137_v16 }
 0x10c   :  { %238 = shalt.err (!%p235_p6)
}
 0x10d   :  { %s239_s0 = scalar_lea.hbm %s334_s4, 16 }
 0x10e   :  { %p240_p7 = scmp.ne.s32.totalorder %s334_s4, %s239_s0  ;;  %p243_p8 = scmp.lt.u32.totalorder %s239_s0, %s334_s4 }
 0x110   :  { %p245_p9 = pnand %p243_p8, %p240_p7 }
 0x112   :  { %248 = shalt.err (!%p245_p9)
}
 0x113   :  { %151 = dma.vmem_to_hbm [thread:$0]  %s149_s18, 16, %s334_s4, [#allocation5]  }
 0x114   :  { %253 = dma.done.wait [#allocation5], 16  }
 0x115   :  { %254 = vsyncadd [#allocation5], 4294967280 }
 0x116   :  { %155 = vsyncpa [#allocation4], 1 }
 0x117   :  { %156 = vsyncpa [#allocation7], 1 }
 0x118   :  { %157 = vsyncpa [#allocation5], 1 }

</bundles_post_ra>
